<compile_context>
chip_gen: v5e
topology: v5e:2x2
jax: 0.10.0
libtpu: 0.0.40
codegen_flags: <defaults>
</compile_context>

<pallas_src>
import functools

import numpy as np
import jax
import jax.numpy as jnp
from jax.experimental import pallas as pl
from jax.experimental.pallas import tpu as pltpu


# ----------------------------------------------------------------------------- kernels

def _labels_kernel(*refs, stride, search_sz, output_sz, r_pos, expand_scale, use_iota):
    """Fused 'cls' / 'reg' / 'iou_w' label generation, vectorized over the batch.

    inputs : anno_ref [B, 4]  (x, y, w, h) float32 boxes
             (optional) grid_ref [2, HW] = (col, row) when output_sz is not a power of two
    output : out_ref [7, B, HW]  channels = (cls, l, t, r, b, inds, iou_w)
    """
    if use_iota:
        anno_ref, out_ref = refs
        W = output_sz
        HW = W * W
        shift = int(W).bit_length() - 1
        k = jax.lax.broadcasted_iota(jnp.int32, (1, HW), 1)
        col = (k & (W - 1)).astype(jnp.float32)          # flat-index % W  (w index)
        row = (k >> shift).astype(jnp.float32)           # flat-index // W (h index)
    else:
        anno_ref, grid_ref, out_ref = refs
        g = grid_ref[...]                                # (2, HW)
        col = g[0:1, :]
        row = g[1:2, :]

    out_half = output_sz // 2
    half_search = float(search_sz // 2)
    # grid_to_search_x/y reconstructed in-kernel (one fma each, free under VALU slack)
    gx = (col - float(out_half)) * stride + half_search  # (1, HW)
    gy = (row - float(out_half)) * stride + half_search  # (1, HW)

    a = anno_ref[...]                                    # (B, 4)
    # xywh -> xyxy (per-batch scalars as (B, 1) columns, broadcast against (1, HW))
    x1 = a[:, 0:1]
    y1 = a[:, 1:2]
    x2 = x1 + a[:, 2:3]
    y2 = y1 + a[:, 3:4]

    # ---- cls: 1 inside L1 radius r_pos of the quantized box center ----
    cx = 0.5 * (x1 + x2)
    cy = 0.5 * (y1 + y2)
    shift_x = cx - search_sz / 2                         # true division, as in torch reference
    shift_y = cy - search_sz / 2
    # torch .long() truncates toward zero; f32 -> i32 convert does the same.
    sz_x = (out_half + (shift_x / stride).astype(jnp.int32)).astype(jnp.float32)   # (B, 1)
    sz_y = (out_half + (shift_y / stride).astype(jnp.int32)).astype(jnp.float32)
    dist = jnp.abs(col - sz_x) + jnp.abs(row - sz_y)                               # (B, HW)
    out_ref[0] = (dist <= r_pos).astype(jnp.float32)

    # ---- reg: (l, t, r, b) distances + positive mask ----
    l = gx - x1
    t = gy - y1
    r = x2 - gx
    b = y2 - gy
    out_ref[1] = l
    out_ref[2] = t
    out_ref[3] = r
    out_ref[4] = b
    out_ref[5] = (jnp.minimum(jnp.minimum(l, t), jnp.minimum(r, b)) > 0).astype(jnp.float32)

    # ---- iou_w: positive mask with the box expanded by expand_scale ----
    bw = jnp.maximum(x2 - x1, 1.0)
    bh = jnp.maximum(y2 - y1, 1.0)
    x1o = x1 - expand_scale * bw
    x2o = x2 + expand_scale * bw
    y1o = y1 - expand_scale * bh
    y2o = y2 + expand_scale * bh
    lo = gx - x1o
    to = gy - y1o
    ro = x2o - gx
    bo = y2o - gy
    out_ref[6] = (jnp.minimum(jnp.minimum(lo, to), jnp.minimum(ro, bo)) > 0).astype(jnp.float32)


def _align_kernel(pred_ref, targ_ref, w_ref, out_ref):
    """IoU between predicted and target (l, t, r, b) maps, weighted & clamped.

    pred_ref / targ_ref : [B, 4, HW] channel dim second (native NCHW reshape for pred)
    w_ref / out_ref     : [B, HW]
    """
    p = pred_ref[...]                                    # (B, 4, HW)
    t = targ_ref[...]
    p_l, p_t, p_r, p_b = p[:, 0, :], p[:, 1, :], p[:, 2, :], p[:, 3, :]
    t_l, t_t, t_r, t_b = t[:, 0, :], t[:, 1, :], t[:, 2, :], t[:, 3, :]

    target_area = (t_l + t_r) * (t_t + t_b)
    pred_area = (p_l + p_r) * (p_t + p_b)
    w_intersect = jnp.minimum(p_l, t_l) + jnp.minimum(p_r, t_r)
    h_intersect = jnp.minimum(p_b, t_b) + jnp.minimum(p_t, t_t)
    area_intersect = w_intersect * h_intersect
    area_union = target_area + pred_area - area_intersect
    # exact division kept (not pl.reciprocal(approx=True)) for parity with the torch reference
    ious = (area_intersect + 1.0) / (area_union + 1.0)
    ious = jnp.abs(w_ref[...] * ious)
    out_ref[...] = jnp.clip(ious, 0.0, 1.0)


def _vmem_spec():
    return pl.BlockSpec(memory_space=pltpu.MemorySpace.VMEM)


# ----------------------------------------------------------------------------- module

class OceanLabelGenerator:
    """JAX/Pallas re-implementation of ltr/models/loss/ocean_label_gen.py::OceanLabelGenerator."""

    def __init__(self, stride, output_sz, batch_size, search_sz):
        self.stride = stride
        self.output_sz = output_sz
        self.batch = batch_size
        self.search_sz = search_sz

        self._use_iota = output_sz > 0 and (output_sz & (output_sz - 1)) == 0
        if self._use_iota:
            self._grid_const = None
        else:
            # non-power-of-two fallback: tiny [2, HW] (col, row) constant; gx/gy rebuilt in-kernel
            col = np.tile(np.arange(output_sz), output_sz)
            row = np.repeat(np.arange(output_sz), output_sz)
            self._grid_const = jnp.asarray(np.stack([col, row]), dtype=jnp.float32)

        # one fused executable per tag path (kernel + layout glue)
        self._jit_cls = jax.jit(self._cls_path)
        self._jit_reg = jax.jit(self._reg_path)
        self._jit_iou_w = jax.jit(self._iou_w_path)
        self._jit_align = jax.jit(self._align_path)

    # -------- public forward (same dispatch as the torch module) --------
    def forward(self, data_dict=None, tag='cls'):
        if tag == 'cls':
            return self._jit_cls(data_dict['anno'])
        elif tag == 'reg':
            return self._jit_reg(data_dict['anno'])
        elif tag == 'iou_w':
            return self._jit_iou_w(data_dict['anno'])
        elif tag == 'align':
            return self._jit_align(data_dict['bbox_pred'], data_dict['reg_label'],
                                   data_dict['reg_weight'])

    __call__ = forward

    # -------- fused label kernel (one gridless pallas_call, single [7,B,HW] output) --------
    def _run_labels(self, anno):
        B = anno.shape[0]
        HW = self.output_sz * self.output_sz
        kernel = functools.partial(
            _labels_kernel,
            stride=float(self.stride),
            search_sz=self.search_sz,
            output_sz=self.output_sz,
            r_pos=2.0,
            expand_scale=0.2,
            use_iota=self._use_iota,
        )
        args = [anno.astype(jnp.float32)]
        in_specs = [_vmem_spec()]
        if not self._use_iota:
            args.append(self._grid_const)
            in_specs.append(_vmem_spec())
        return pl.pallas_call(
            kernel,
            in_specs=in_specs,
            out_specs=_vmem_spec(),
            out_shape=jax.ShapeDtypeStruct((7, B, HW), jnp.float32),
        )(*args)

    def _cls_path(self, anno):
        B = anno.shape[0]
        H = W = self.output_sz
        out = self._run_labels(anno)
        return out[0].reshape(B, H, W)

    def _reg_path(self, anno):
        B = anno.shape[0]
        H = W = self.output_sz
        out = self._run_labels(anno)
        # torch-convention [B, H, W, 4] only materialized here (lazy for cls / iou_w)
        reg_label = jnp.transpose(out[1:5].reshape(4, B, H, W), (1, 2, 3, 0))
        inds_nonzero = out[5].reshape(B, H, W)
        return reg_label, inds_nonzero

    def _iou_w_path(self, anno):
        B = anno.shape[0]
        H = W = self.output_sz
        out = self._run_labels(anno)
        return out[6].reshape(B, H, W)

    # -------- align branch (depends on the network's bbox_pred) --------
    def _align_path(self, bbox_pred, reg_label, reg_weight):
        B, _, H, W = bbox_pred.shape
        HW = H * W
        # bbox_pred is NCHW: [B,4,H,W] -> [B,4,HW] is a free contiguous reshape (no relayout)
        pred = bbox_pred.astype(jnp.float32).reshape(B, 4, HW)
        # reg_label is torch-convention [B,H,W,4]; one small relayout to channel-second layout
        targ = jnp.transpose(reg_label.astype(jnp.float32), (0, 3, 1, 2)).reshape(B, 4, HW)
        w = reg_weight.astype(jnp.float32).reshape(B, HW)

        ious = pl.pallas_call(
            _align_kernel,
            in_specs=[_vmem_spec(), _vmem_spec(), _vmem_spec()],
            out_specs=_vmem_spec(),
            out_shape=jax.ShapeDtypeStruct((B, HW), jnp.float32),
        )(pred, targ, w)
        return ious.reshape(B, H, W)


# ----------------------------------------------------------------------------- reference

def _ref_labels(anno, stride, output_sz, search_sz):
    """Pure numpy (float32) reference mirroring the torch module."""
    anno = np.asarray(anno, np.float32)
    B = anno.shape[0]
    sz = output_sz
    half = sz // 2
    xg, yg = np.meshgrid(np.arange(sz) - half, np.arange(sz) - half)       # 'xy' indexing
    gx = (xg * stride + search_sz // 2).astype(np.float32)
    gy = (yg * stride + search_sz // 2).astype(np.float32)
    x1, y1 = anno[:, 0], anno[:, 1]
    x2, y2 = x1 + anno[:, 2], y1 + anno[:, 3]

    # cls
    cx, cy = (x1 + x2) / 2, (y1 + y2) / 2
    shift_x, shift_y = cx - search_sz / 2, cy - search_sz / 2
    sz_x = half + np.trunc(shift_x / stride).astype(np.int64)
    sz_y = half + np.trunc(shift_y / stride).astype(np.int64)
    cls = np.zeros((B, sz, sz), np.float32)
    for i in range(B):
        xs = np.abs(np.arange(sz) - sz_x[i])
        ys = np.abs(np.arange(sz) - sz_y[i])
        dist = xs[:, None] + ys[None, :]
        cls[i] = (dist <= 2).astype(np.float32).T

    # reg
    l = gx[None] - x1[:, None, None]
    t = gy[None] - y1[:, None, None]
    r = x2[:, None, None] - gx[None]
    b = y2[:, None, None] - gy[None]
    reg = np.stack([l, t, r, b], axis=-1).astype(np.float32)
    inds = (reg.min(-1) > 0).astype(np.float32)

    # iou_w
    w = np.maximum(x2 - x1, np.float32(1))
    h = np.maximum(y2 - y1, np.float32(1))
    x1o, x2o = x1 - np.float32(0.2) * w, x2 + np.float32(0.2) * w
    y1o, y2o = y1 - np.float32(0.2) * h, y2 + np.float32(0.2) * h
    lo = gx[None] - x1o[:, None, None]
    to = gy[None] - y1o[:, None, None]
    ro = x2o[:, None, None] - gx[None]
    bo = y2o[:, None, None] - gy[None]
    iouw = (np.stack([lo, to, ro, bo], -1).min(-1) > 0).astype(np.float32)
    return cls, reg, inds, iouw


def _ref_align(bbox_pred, reg_label, reg_weight):
    pred = np.transpose(np.asarray(bbox_pred, np.float32), (0, 2, 3, 1))
    targ = np.asarray(reg_label, np.float32)
    w = np.asarray(reg_weight, np.float32)
    p_l, p_t, p_r, p_b = pred[..., 0], pred[..., 1], pred[..., 2], pred[..., 3]
    t_l, t_t, t_r, t_b = targ[..., 0], targ[..., 1], targ[..., 2], targ[..., 3]
    target_area = (t_l + t_r) * (t_t + t_b)
    pred_area = (p_l + p_r) * (p_t + p_b)
    w_i = np.minimum(p_l, t_l) + np.minimum(p_r, t_r)
    h_i = np.minimum(p_b, t_b) + np.minimum(p_t, t_t)
    a_i = w_i * h_i
    a_u = target_area + pred_area - a_i
    ious = np.abs(w * ((a_i + 1.0) / (a_u + 1.0)))
    return np.clip(ious, 0.0, 1.0)


# ----------------------------------------------------------------------------- demo

if __name__ == "__main__":
    B = 2
    OUTPUT_SZ = 16     # response-map spatial size (H = W)
    STRIDE = 8
    SEARCH_SZ = 128    # search image size

    gen = OceanLabelGenerator(stride=STRIDE, output_sz=OUTPUT_SZ,
                              batch_size=B, search_sz=SEARCH_SZ)

    key = jax.random.PRNGKey(0)
    k_xy, k_wh, k_pred = jax.random.split(key, 3)
    # ground-truth boxes in xywh, well inside the 128x128 search region
    xy = jax.random.uniform(k_xy, (B, 2), minval=20.0, maxval=60.0)
    wh = jax.random.uniform(k_wh, (B, 2), minval=30.0, maxval=70.0)
    anno = jnp.concatenate([xy, wh], axis=1).astype(jnp.float32)          # [B, 4] xywh

    cls_label = gen({'anno': anno}, tag='cls')                            # [B, H, W]
    reg_label, reg_weight = gen({'anno': anno}, tag='reg')                # [B,H,W,4], [B,H,W]
    iou_w = gen({'anno': anno}, tag='iou_w')                              # [B, H, W]

    bbox_pred = jax.random.uniform(k_pred, (B, 4, OUTPUT_SZ, OUTPUT_SZ),
                                   minval=0.0, maxval=60.0).astype(jnp.float32)  # NCHW
    align_label = gen({'bbox_pred': bbox_pred,
                       'reg_label': reg_label,
                       'reg_weight': reg_weight}, tag='align')            # [B, H, W]

    for out in (cls_label, reg_label, reg_weight, iou_w, align_label):
        jax.block_until_ready(out)

    # shape checks
    assert cls_label.shape == (B, OUTPUT_SZ, OUTPUT_SZ)
    assert reg_label.shape == (B, OUTPUT_SZ, OUTPUT_SZ, 4)
    assert reg_weight.shape == (B, OUTPUT_SZ, OUTPUT_SZ)
    assert iou_w.shape == (B, OUTPUT_SZ, OUTPUT_SZ)
    assert align_label.shape == (B, OUTPUT_SZ, OUTPUT_SZ)

    # numerical checks against a pure-numpy float32 reference of the torch module
    ref_cls, ref_reg, ref_inds, ref_iouw = _ref_labels(np.asarray(anno), STRIDE,
                                                       OUTPUT_SZ, SEARCH_SZ)
    ref_align = _ref_align(np.asarray(bbox_pred), ref_reg, ref_inds)
    np.testing.assert_allclose(np.asarray(cls_label), ref_cls, rtol=1e-5, atol=1e-5)
    np.testing.assert_allclose(np.asarray(reg_label), ref_reg, rtol=1e-5, atol=1e-5)
    np.testing.assert_allclose(np.asarray(reg_weight), ref_inds, rtol=1e-5, atol=1e-5)
    np.testing.assert_allclose(np.asarray(iou_w), ref_iouw, rtol=1e-5, atol=1e-5)
    np.testing.assert_allclose(np.asarray(align_label), ref_align, rtol=1e-5, atol=1e-5)

    # quick semantic sanity checks
    assert bool(jnp.all((cls_label == 0.0) | (cls_label == 1.0)))
    assert bool(jnp.all((reg_weight == 0.0) | (reg_weight == 1.0)))
    assert bool(jnp.all((align_label >= 0.0) & (align_label <= 1.0)))
    print("KERNEL_OK")
</pallas_src>

<mosaic_0001>
module attributes {stable_mosaic.version = 11 : i64} {
  func.func @_labels_kernel(%arg0: memref<2x4xf32, #tpu.memory_space<vmem>>, %arg1: memref<7x2x256xf32, #tpu.memory_space<vmem>>) attributes {dimension_semantics = [], scalar_prefetch = 0 : i64, scratch_operands = 0 : i64, tpu.core_type = #tpu.core_type<tc>} {
    %0 = tpu.iota {dimensions = array<i32: 1>} : vector<1x256xi32>
    %c15_i32 = arith.constant 15 : i32
    %1 = vector.broadcast %c15_i32 : i32 to vector<1x256xi32>
    %2 = arith.andi %0, %1 : vector<1x256xi32>
    %3 = arith.sitofp %2 : vector<1x256xi32> to vector<1x256xf32>
    %c4_i32 = arith.constant 4 : i32
    %4 = vector.broadcast %c4_i32 : i32 to vector<1x256xi32>
    %5 = arith.shrsi %0, %4 : vector<1x256xi32>
    %6 = arith.sitofp %5 : vector<1x256xi32> to vector<1x256xf32>
    %cst = arith.constant 8.000000e+00 : f32
    %7 = vector.broadcast %cst : f32 to vector<1x256xf32>
    %8 = arith.subf %3, %7 : vector<1x256xf32>
    %cst_0 = arith.constant 8.000000e+00 : f32
    %9 = vector.broadcast %cst_0 : f32 to vector<1x256xf32>
    %10 = arith.mulf %8, %9 : vector<1x256xf32>
    %cst_1 = arith.constant 6.400000e+01 : f32
    %11 = vector.broadcast %cst_1 : f32 to vector<1x256xf32>
    %12 = arith.addf %10, %11 : vector<1x256xf32>
    %cst_2 = arith.constant 8.000000e+00 : f32
    %13 = vector.broadcast %cst_2 : f32 to vector<1x256xf32>
    %14 = arith.subf %6, %13 : vector<1x256xf32>
    %cst_3 = arith.constant 8.000000e+00 : f32
    %15 = vector.broadcast %cst_3 : f32 to vector<1x256xf32>
    %16 = arith.mulf %14, %15 : vector<1x256xf32>
    %cst_4 = arith.constant 6.400000e+01 : f32
    %17 = vector.broadcast %cst_4 : f32 to vector<1x256xf32>
    %18 = arith.addf %16, %17 : vector<1x256xf32>
    %c0 = arith.constant 0 : index
    %c0_5 = arith.constant 0 : index
    %19 = vector.load %arg0[%c0, %c0_5] : memref<2x4xf32, #tpu.memory_space<vmem>>, vector<2x4xf32>
    %20 = vector.extract_strided_slice %19 {offsets = [0, 0], sizes = [2, 1], strides = [1, 1]} : vector<2x4xf32> to vector<2x1xf32>
    %21 = vector.extract_strided_slice %19 {offsets = [0, 1], sizes = [2, 1], strides = [1, 1]} : vector<2x4xf32> to vector<2x1xf32>
    %22 = vector.extract_strided_slice %19 {offsets = [0, 2], sizes = [2, 1], strides = [1, 1]} : vector<2x4xf32> to vector<2x1xf32>
    %23 = arith.addf %20, %22 : vector<2x1xf32>
    %24 = vector.extract_strided_slice %19 {offsets = [0, 3], sizes = [2, 1], strides = [1, 1]} : vector<2x4xf32> to vector<2x1xf32>
    %25 = arith.addf %21, %24 : vector<2x1xf32>
    %26 = arith.addf %20, %23 : vector<2x1xf32>
    %cst_6 = arith.constant 5.000000e-01 : f32
    %27 = vector.broadcast %cst_6 : f32 to vector<2x1xf32>
    %28 = arith.mulf %27, %26 : vector<2x1xf32>
    %29 = arith.addf %21, %25 : vector<2x1xf32>
    %cst_7 = arith.constant 5.000000e-01 : f32
    %30 = vector.broadcast %cst_7 : f32 to vector<2x1xf32>
    %31 = arith.mulf %30, %29 : vector<2x1xf32>
    %cst_8 = arith.constant 6.400000e+01 : f32
    %32 = vector.broadcast %cst_8 : f32 to vector<2x1xf32>
    %33 = arith.subf %28, %32 : vector<2x1xf32>
    %cst_9 = arith.constant 6.400000e+01 : f32
    %34 = vector.broadcast %cst_9 : f32 to vector<2x1xf32>
    %35 = arith.subf %31, %34 : vector<2x1xf32>
    %cst_10 = arith.constant 8.000000e+00 : f32
    %36 = vector.broadcast %cst_10 : f32 to vector<2x1xf32>
    %37 = arith.divf %33, %36 : vector<2x1xf32>
    %38 = arith.fptosi %37 : vector<2x1xf32> to vector<2x1xi32>
    %c8_i32 = arith.constant 8 : i32
    %39 = vector.broadcast %c8_i32 : i32 to vector<2x1xi32>
    %40 = arith.addi %39, %38 : vector<2x1xi32>
    %41 = arith.sitofp %40 : vector<2x1xi32> to vector<2x1xf32>
    %cst_11 = arith.constant 8.000000e+00 : f32
    %42 = vector.broadcast %cst_11 : f32 to vector<2x1xf32>
    %43 = arith.divf %35, %42 : vector<2x1xf32>
    %44 = arith.fptosi %43 : vector<2x1xf32> to vector<2x1xi32>
    %c8_i32_12 = arith.constant 8 : i32
    %45 = vector.broadcast %c8_i32_12 : i32 to vector<2x1xi32>
    %46 = arith.addi %45, %44 : vector<2x1xi32>
    %47 = arith.sitofp %46 : vector<2x1xi32> to vector<2x1xf32>
    %48 = vector.broadcast %3 : vector<1x256xf32> to vector<2x256xf32>
    %49 = vector.broadcast %41 : vector<2x1xf32> to vector<2x256xf32>
    %50 = arith.subf %48, %49 : vector<2x256xf32>
    %51 = math.absf %50 : vector<2x256xf32>
    %52 = vector.broadcast %6 : vector<1x256xf32> to vector<2x256xf32>
    %53 = vector.broadcast %47 : vector<2x1xf32> to vector<2x256xf32>
    %54 = arith.subf %52, %53 : vector<2x256xf32>
    %55 = math.absf %54 : vector<2x256xf32>
    %56 = arith.addf %51, %55 : vector<2x256xf32>
    %cst_13 = arith.constant 2.000000e+00 : f32
    %57 = vector.broadcast %cst_13 : f32 to vector<2x256xf32>
    %58 = arith.cmpf ole, %56, %57 : vector<2x256xf32>
    %59 = arith.extui %58 : vector<2x256xi1> to vector<2x256xi32>
    %60 = arith.sitofp %59 : vector<2x256xi32> to vector<2x256xf32>
    %c0_14 = arith.constant 0 : index
    %c0_15 = arith.constant 0 : index
    %c0_16 = arith.constant 0 : index
    %61 = vector.load %arg1[%c0_14, %c0_15, %c0_16] : memref<7x2x256xf32, #tpu.memory_space<vmem>>, vector<1x2x256xf32>
    %62 = vector.shape_cast %61 : vector<1x2x256xf32> to vector<2x256xf32>
    %63 = vector.shape_cast %60 : vector<2x256xf32> to vector<1x2x256xf32>
    tpu.vector_store %arg1[%c0_14, %c0_15, %c0_16], %63 {strides = array<i32>} : memref<7x2x256xf32, #tpu.memory_space<vmem>>, vector<1x2x256xf32>,
    %64 = vector.broadcast %12 : vector<1x256xf32> to vector<2x256xf32>
    %65 = vector.broadcast %20 : vector<2x1xf32> to vector<2x256xf32>
    %66 = arith.subf %64, %65 : vector<2x256xf32>
    %67 = vector.broadcast %18 : vector<1x256xf32> to vector<2x256xf32>
    %68 = vector.broadcast %21 : vector<2x1xf32> to vector<2x256xf32>
    %69 = arith.subf %67, %68 : vector<2x256xf32>
    %70 = vector.broadcast %23 : vector<2x1xf32> to vector<2x256xf32>
    %71 = vector.broadcast %12 : vector<1x256xf32> to vector<2x256xf32>
    %72 = arith.subf %70, %71 : vector<2x256xf32>
    %73 = vector.broadcast %25 : vector<2x1xf32> to vector<2x256xf32>
    %74 = vector.broadcast %18 : vector<1x256xf32> to vector<2x256xf32>
    %75 = arith.subf %73, %74 : vector<2x256xf32>
    %c1 = arith.constant 1 : index
    %c0_17 = arith.constant 0 : index
    %c0_18 = arith.constant 0 : index
    %76 = vector.load %arg1[%c1, %c0_17, %c0_18] : memref<7x2x256xf32, #tpu.memory_space<vmem>>, vector<1x2x256xf32>
    %77 = vector.shape_cast %76 : vector<1x2x256xf32> to vector<2x256xf32>
    %78 = vector.shape_cast %66 : vector<2x256xf32> to vector<1x2x256xf32>
    tpu.vector_store %arg1[%c1, %c0_17, %c0_18], %78 {strides = array<i32>} : memref<7x2x256xf32, #tpu.memory_space<vmem>>, vector<1x2x256xf32>,
    %c2 = arith.constant 2 : index
    %c0_19 = arith.constant 0 : index
    %c0_20 = arith.constant 0 : index
    %79 = vector.load %arg1[%c2, %c0_19, %c0_20] : memref<7x2x256xf32, #tpu.memory_space<vmem>>, vector<1x2x256xf32>
    %80 = vector.shape_cast %79 : vector<1x2x256xf32> to vector<2x256xf32>
    %81 = vector.shape_cast %69 : vector<2x256xf32> to vector<1x2x256xf32>
    tpu.vector_store %arg1[%c2, %c0_19, %c0_20], %81 {strides = array<i32>} : memref<7x2x256xf32, #tpu.memory_space<vmem>>, vector<1x2x256xf32>,
    %c3 = arith.constant 3 : index
    %c0_21 = arith.constant 0 : index
    %c0_22 = arith.constant 0 : index
    %82 = vector.load %arg1[%c3, %c0_21, %c0_22] : memref<7x2x256xf32, #tpu.memory_space<vmem>>, vector<1x2x256xf32>
    %83 = vector.shape_cast %82 : vector<1x2x256xf32> to vector<2x256xf32>
    %84 = vector.shape_cast %72 : vector<2x256xf32> to vector<1x2x256xf32>
    tpu.vector_store %arg1[%c3, %c0_21, %c0_22], %84 {strides = array<i32>} : memref<7x2x256xf32, #tpu.memory_space<vmem>>, vector<1x2x256xf32>,
    %c4 = arith.constant 4 : index
    %c0_23 = arith.constant 0 : index
    %c0_24 = arith.constant 0 : index
    %85 = vector.load %arg1[%c4, %c0_23, %c0_24] : memref<7x2x256xf32, #tpu.memory_space<vmem>>, vector<1x2x256xf32>
    %86 = vector.shape_cast %85 : vector<1x2x256xf32> to vector<2x256xf32>
    %87 = vector.shape_cast %75 : vector<2x256xf32> to vector<1x2x256xf32>
    tpu.vector_store %arg1[%c4, %c0_23, %c0_24], %87 {strides = array<i32>} : memref<7x2x256xf32, #tpu.memory_space<vmem>>, vector<1x2x256xf32>,
    %88 = arith.minimumf %66, %69 : vector<2x256xf32>
    %89 = arith.minimumf %72, %75 : vector<2x256xf32>
    %90 = arith.minimumf %88, %89 : vector<2x256xf32>
    %cst_25 = arith.constant 0.000000e+00 : f32
    %91 = vector.broadcast %cst_25 : f32 to vector<2x256xf32>
    %92 = arith.cmpf ogt, %90, %91 : vector<2x256xf32>
    %93 = arith.extui %92 : vector<2x256xi1> to vector<2x256xi32>
    %94 = arith.sitofp %93 : vector<2x256xi32> to vector<2x256xf32>
    %c5 = arith.constant 5 : index
    %c0_26 = arith.constant 0 : index
    %c0_27 = arith.constant 0 : index
    %95 = vector.load %arg1[%c5, %c0_26, %c0_27] : memref<7x2x256xf32, #tpu.memory_space<vmem>>, vector<1x2x256xf32>
    %96 = vector.shape_cast %95 : vector<1x2x256xf32> to vector<2x256xf32>
    %97 = vector.shape_cast %94 : vector<2x256xf32> to vector<1x2x256xf32>
    tpu.vector_store %arg1[%c5, %c0_26, %c0_27], %97 {strides = array<i32>} : memref<7x2x256xf32, #tpu.memory_space<vmem>>, vector<1x2x256xf32>,
    %98 = arith.subf %23, %20 : vector<2x1xf32>
    %cst_28 = arith.constant 1.000000e+00 : f32
    %99 = vector.broadcast %cst_28 : f32 to vector<2x1xf32>
    %100 = arith.maximumf %98, %99 : vector<2x1xf32>
    %101 = arith.subf %25, %21 : vector<2x1xf32>
    %cst_29 = arith.constant 1.000000e+00 : f32
    %102 = vector.broadcast %cst_29 : f32 to vector<2x1xf32>
    %103 = arith.maximumf %101, %102 : vector<2x1xf32>
    %cst_30 = arith.constant 2.000000e-01 : f32
    %104 = vector.broadcast %cst_30 : f32 to vector<2x1xf32>
    %105 = arith.mulf %104, %100 : vector<2x1xf32>
    %106 = arith.subf %20, %105 : vector<2x1xf32>
    %cst_31 = arith.constant 2.000000e-01 : f32
    %107 = vector.broadcast %cst_31 : f32 to vector<2x1xf32>
    %108 = arith.mulf %107, %100 : vector<2x1xf32>
    %109 = arith.addf %23, %108 : vector<2x1xf32>
    %cst_32 = arith.constant 2.000000e-01 : f32
    %110 = vector.broadcast %cst_32 : f32 to vector<2x1xf32>
    %111 = arith.mulf %110, %103 : vector<2x1xf32>
    %112 = arith.subf %21, %111 : vector<2x1xf32>
    %cst_33 = arith.constant 2.000000e-01 : f32
    %113 = vector.broadcast %cst_33 : f32 to vector<2x1xf32>
    %114 = arith.mulf %113, %103 : vector<2x1xf32>
    %115 = arith.addf %25, %114 : vector<2x1xf32>
    %116 = vector.broadcast %12 : vector<1x256xf32> to vector<2x256xf32>
    %117 = vector.broadcast %106 : vector<2x1xf32> to vector<2x256xf32>
    %118 = arith.subf %116, %117 : vector<2x256xf32>
    %119 = vector.broadcast %18 : vector<1x256xf32> to vector<2x256xf32>
    %120 = vector.broadcast %112 : vector<2x1xf32> to vector<2x256xf32>
    %121 = arith.subf %119, %120 : vector<2x256xf32>
    %122 = vector.broadcast %109 : vector<2x1xf32> to vector<2x256xf32>
    %123 = vector.broadcast %12 : vector<1x256xf32> to vector<2x256xf32>
    %124 = arith.subf %122, %123 : vector<2x256xf32>
    %125 = vector.broadcast %115 : vector<2x1xf32> to vector<2x256xf32>
    %126 = vector.broadcast %18 : vector<1x256xf32> to vector<2x256xf32>
    %127 = arith.subf %125, %126 : vector<2x256xf32>
    %128 = arith.minimumf %118, %121 : vector<2x256xf32>
    %129 = arith.minimumf %124, %127 : vector<2x256xf32>
    %130 = arith.minimumf %128, %129 : vector<2x256xf32>
    %cst_34 = arith.constant 0.000000e+00 : f32
    %131 = vector.broadcast %cst_34 : f32 to vector<2x256xf32>
    %132 = arith.cmpf ogt, %130, %131 : vector<2x256xf32>
    %133 = arith.extui %132 : vector<2x256xi1> to vector<2x256xi32>
    %134 = arith.sitofp %133 : vector<2x256xi32> to vector<2x256xf32>
    %c6 = arith.constant 6 : index
    %c0_35 = arith.constant 0 : index
    %c0_36 = arith.constant 0 : index
    %135 = vector.load %arg1[%c6, %c0_35, %c0_36] : memref<7x2x256xf32, #tpu.memory_space<vmem>>, vector<1x2x256xf32>
    %136 = vector.shape_cast %135 : vector<1x2x256xf32> to vector<2x256xf32>
    %137 = vector.shape_cast %134 : vector<2x256xf32> to vector<1x2x256xf32>
    tpu.vector_store %arg1[%c6, %c0_35, %c0_36], %137 {strides = array<i32>} : memref<7x2x256xf32, #tpu.memory_space<vmem>>, vector<1x2x256xf32>,
    return
  }
}

</mosaic_0001>

<bundles_post_ra>
// kernel: squeeze.1
= control target key start
LH: loop header
LB: loop body
LE: loop exit
PB: predicated region body
PF: predicated region fallthrough
CT: control target
= control target key end

     0   :  { %s144_s0 = inlined_call_operand.vmem [shape: f32[1,2,256], index: 0, kind: input, shape index: {}]   ;;  %s145_s1 = inlined_call_operand.hbm [shape: f32[2,16,16], index: 1, kind: output, shape index: {}]  }
   0x1   :  { %v73_v0 = vld [vmem:[%s144_s0 + $0x2] sm:$0x3]  ;;  %v9_v1 = vld [vmem:[%s144_s0] sm:$0x3] }
   0x2   :  { %8 = vst [vmem:[#allocation2 + $0x8] sm:$0x3] %v73_v0 }
   0x3   :  { %10 = vst [vmem:[#allocation2] sm:$0x3] %v9_v1 }
   0x4   :  { %2 = vsyncpa [#allocation1], 0  ;;  %s108_s0 = smov 112   ;;  %s109_s10 = smov 80   ;;  %vm12_vm0 = vcmask 130048  }
   0x5   :  { %s110_s11 = smov 48   ;;  %s111_s12 = smov 96  }
   0x6   :  { %s112_s13 = smov 64   ;;  %s113_s14 = smov 32  }
   0x7   :  { %s114_s15 = smov 16   ;;  %s115_s16 = smov [#allocation0]  }
   0x8   :  { %s64_s17 = sshll.u32 %s115_s16, 4  ;;  %s66_s1 = sshll.u32 %s145_s1, 4  ;;  %s65_s17 = int_to_ptr.vmem [resolvable:$true] %s64_s17  ;;  %s67_s1 = int_to_ptr.hbm [resolvable:$true] %s66_s1 }
   0x9   :  { %v15_v5 = vld [vmem:[#allocation2 + $0x8] sm:$0x3]  }
   0xa   :  { %v19_v2 = vld.sshfl [vmem:[#allocation2] sm:$0xff pattern:$0x99999180]   ;;  %18 = vst.msk [vmem:[#allocation0 + $0x8] ss:$16 sm:$0x3] %vm12_vm0, %v15_v5  }
   0xb   :  { %20 = vrot.lane.b32.xlu0 %v19_v2, %s108_s0  ;;  %32 = vrot.lane.b32.xlu1 %v19_v2, %s109_s10  ;;  %v11_v4 = vld [vmem:[#allocation2] sm:$0x3]  }
   0xc   :  { %44 = vrot.lane.b32.xlu2 %v19_v2, %s110_s11  ;;  %13 = vst.msk [vmem:[#allocation0] ss:$16 sm:$0x3] %vm12_vm0, %v11_v4  }
  0x13   :  { %26 = vrot.lane.b32.xlu0 %v19_v2, %s111_s12  ;;  %38 = vrot.lane.b32.xlu1 %v19_v2, %s112_s13 }
  0x14   :  { %50 = vrot.lane.b32.xlu2 %v19_v2, %s113_s14 }
  0x1b   :  { %56 = vrot.lane.b32.xlu0 %v19_v2, %s114_s15 }
  0x66   :  { %v45_v3 = vpop.permute.xlu2 %44  }
  0x67   :  { %48 = vst.msk [vmem:[#allocation0 + $0x5] ss:$8 sm:$0xf] %vm12_vm0, %v45_v3  }
  0x6e   :  { %v51_v6 = vpop.permute.xlu2 %50  }
  0x6f   :  { %54 = vst.msk [vmem:[#allocation0 + $0x6] ss:$8 sm:$0xf] %vm12_vm0, %v51_v6  }
  0x7d   :  { %v21_v7 = vpop.permute.xlu0 %20   ;;  %v33_v8 = vpop.permute.xlu1 %32  }
  0x7e   :  { %24 = vst.msk [vmem:[#allocation0 + $0x1] ss:$8 sm:$0xf] %vm12_vm0, %v21_v7  }
  0x7f   :  { %36 = vst.msk [vmem:[#allocation0 + $0x3] ss:$8 sm:$0xf] %vm12_vm0, %v33_v8  }
  0x85   :  { %v27_v9 = vpop.permute.xlu0 %26   ;;  %v39_v10 = vpop.permute.xlu1 %38  }
  0x86   :  { %30 = vst.msk [vmem:[#allocation0 + $0x2] ss:$8 sm:$0xf] %vm12_vm0, %v27_v9  }
  0x87   :  { %42 = vst.msk [vmem:[#allocation0 + $0x4] ss:$8 sm:$0xf] %vm12_vm0, %v39_v10  }
  0x8d   :  { %v57_v11 = vpop.permute.xlu0 %56  }
  0x8e   :  { %60 = vst.msk [vmem:[#allocation0 + $0x7] ss:$8 sm:$0xf] %vm12_vm0, %v57_v11  }
  0x8f   :  { %69 = dma.vmem_to_hbm [thread:$0]  %s65_s17, 512, %s67_s1, [#allocation1]  }
  0x90   :  { %106 = dma.done.wait [#allocation1], 512  }
  0x91   :  { %107 = vsyncadd [#allocation1], 4294966784 }
  0x92   :  { %72 = vsyncpa [#allocation1], 1 }

// kernel: _cls_path.1
= control target key start
LH: loop header
LB: loop body
LE: loop exit
PB: predicated region body
PF: predicated region fallthrough
CT: control target
= control target key end

     0   :  { %6 = vsyncpa [#allocation3], 0  ;;  %s288_s9 = smov [#allocation2]   ;;  %s375_s0 = inlined_call_operand.hbm [shape: f32[2,4], index: 0, kind: input, shape index: {}]   ;;  %s376_s1 = inlined_call_operand.vmem [shape: f32[7,2,256], index: 1, kind: output, shape index: {}]  }
   0x1   :  { %s12_s8 = sshll.u32 %s375_s0, 4  ;;  %s14_s10 = sshll.u32 %s288_s9, 4  ;;  %s13_s8 = int_to_ptr.hbm [resolvable:$true] %s12_s8  ;;  %s15_s10 = int_to_ptr.vmem [resolvable:$true] %s14_s10 }
   0x2   :  { %17 = dma.hbm_to_vmem [thread:$0]  %s13_s8, 32, %s15_s10, [#allocation3]  }
   0x3   :  { %286 = dma.done.wait [#allocation3], 32  }
   0x4   :  { %287 = vsyncadd [#allocation3], 4294967264  ;;  %v289_v0 = vmov 1   ;;  %v290_v1 = vmov 0   ;;  %v45_v2 = vld [vmem:[#allocation2] sm:$0x3]  ;;  %v22_v8 = vlaneseq }
   0x5   :  { %253 = vset.pattern.permute.xlu2 %v289_v0  ;;  %252 = vset.pattern.permute.xlu1 %v290_v1  ;;  %s291_s11 = smov 126   ;;  %v292_v3 = vmov 8.0   ;;  %vm93_vm2 = vcmask 1041408  }
   0x6   :  { %256 = vset.pattern.permute.xlu0 %v290_v1  ;;  %104 = vperm.xlu2 %253, %v45_v2   ;;  %260 = vrcp.f32 %v292_v3  ;;  %v23_v10 = vand.u32 127, %v22_v8 }
   0x7   :  { %47 = vrot.lane.b32.xlu0 %v45_v2, %s291_s11  ;;  %98 = vperm.xlu1 %252, %v45_v2  }
   0x8   :  { %v24_v13 = vadd.s32 128, %v23_v10  ;;  %v29_v14 = vshra.s32 %v23_v10, 4  ;;  %v25_v45 = vand.u32 15, %v23_v10 }
   0xa   :  { %v30_v17 = vshra.s32 %v24_v13, 4  ;;  %v312_v18 = vcvt.s32.f32 %v29_v14  ;;  %v26_v46 = vand.u32 15, %v24_v13  ;;  %v27_v47 = vcvt.s32.f32 %v25_v45 }
   0xc   :  { %v261_v4 = vpop.eup %260  ;;  %v314_v22 = vcvt.s32.f32 %v30_v17  ;;  %v226_v23 = vadd.f32 -8.0, %v312_v18  ;;  %v28_v48 = vcvt.s32.f32 %v26_v46  ;;  %v224_v49 = vadd.f32 -8.0, %v27_v47 }
   0xd   :  { %v55_v5 = vmul.f32 8.0, %v261_v4  ;;  %vm59_vm0 = vweird.f32 %v261_v4 }
   0xe   :  { %254 = vset.pattern.permute.xlu2 %v290_v1  ;;  %v227_v26 = vadd.f32 -8.0, %v314_v22  ;;  %v41_v27 = vmul.f32 8.0, %v226_v23  ;;  %v225_v50 = vadd.f32 -8.0, %v28_v48  ;;  %v35_v51 = vmul.f32 8.0, %v224_v49 }
   0xf   :  { %255 = vset.pattern.permute.xlu1 %v289_v0  ;;  %v56_v6 = vsub.f32 1.0, %v55_v5 }
  0x10   :  { %v42_v30 = vmul.f32 8.0, %v227_v26  ;;  %v318_v33 = vadd.f32 64.0, %v41_v27  ;;  %v36_v52 = vmul.f32 8.0, %v225_v50  ;;  %v331_v53 = vadd.f32 64.0, %v35_v51 }
  0x11   :  { %v57_v7 = vmul.f32 %v261_v4, %v56_v6 }
  0x12   :  { %v320_v34 = vadd.f32 64.0, %v42_v30  ;;  %v333_v54 = vadd.f32 64.0, %v36_v52 }
  0x13   :  { %v58_v12 = vadd.f32 %v261_v4, %v57_v7 }
  0x15   :  { %v60_v21 = vsel %vm59_vm0, %v261_v4, %v58_v12  ;;  %v293_v12 = vmov 0.0  }
  0x60   :  { %v105_v36 = vpop.permute.xlu2 %104 }
  0x61   :  { %v107_v38 = vsub.f32 %v318_v33, %v105_v36  ;;  %v108_v39 = vsub.f32 %v320_v34, %v105_v36 }
  0x63   :  { %v131_v41 = vrot.slane %v108_v39, 6 }
  0x65   :  { %v132_v44 = vsel %vm93_vm2, %v107_v38, %v131_v41 }
  0x66   :  { %232 = vst [vmem:[%s376_s1 + $0x8] sm:$0xf] %v132_v44 }
  0x79   :  { %v48_v9 = vpop.permute.xlu0 %47  ;;  %v99_v55 = vpop.permute.xlu1 %98 }
  0x7a   :  { %v50_v11 = vadd.f32 %v48_v9, %v45_v2  ;;  %v101_v56 = vsub.f32 %v331_v53, %v99_v55  ;;  %v102_v57 = vsub.f32 %v333_v54, %v99_v55 }
  0x7c   :  { %v51_v15 = vadd.f32 %v50_v11, %v45_v2  ;;  %117 = vperm.xlu1 %255, %v50_v11   ;;  %111 = vperm.xlu2 %254, %v50_v11   ;;  %v169_v16 = vsub.f32 %v50_v11, %v45_v2  ;;  %v124_v58 = vrot.slane %v102_v57, 6  ;;  %v151_v3 = vmin.f32 %v102_v57, %v108_v39 }
  0x7e   :  { %v52_v19 = vmul.f32 0.5, %v51_v15  ;;  %v170_v20 = vmax.f32 %v169_v16, 1.0  ;;  %v125_v59 = vsel %vm93_vm2, %v101_v56, %v124_v58 }
  0x7f   :  { %231 = vst [vmem:[%s376_s1 + $0x4] sm:$0xf] %v125_v59 }
  0x80   :  { %v171_v24 = vmul.f32 0.2, %v170_v20  ;;  %v228_v25 = vadd.f32 -64.0, %v52_v19 }
  0x82   :  { %v172_v28 = vsub.f32 %v45_v2, %v171_v24  ;;  %v61_v29 = vmul.f32 %v228_v25, %v60_v21  ;;  %v173_v42 = vadd.f32 %v171_v24, %v50_v11  ;;  %v150_v2 = vmin.f32 %v101_v56, %v107_v38 }
  0x84   :  { %176 = vperm.xlu2 %254, %v172_v28   ;;  %vm241_vm1 = vcmp.lt.s32.totalorder %v61_v29, 0  ;;  %v242_v31 = vceil.f32 %v61_v29  ;;  %v243_v32 = vfloor.f32 %v61_v29 }
  0x86   :  { %v244_v35 = vsel %vm241_vm1, %v242_v31, %v243_v32 }
  0x87   :  { %v245_v37 = vcvt.f32.s32 %v244_v35 }
  0x89   :  { %v63_v40 = vadd.s32 8, %v245_v37 }
  0x8b   :  { %v64_v43 = vcvt.s32.f32 %v63_v40 }
  0x8c   :  { %259 = vset.pattern.permute.xlu2 %v289_v0 }
  0x8d   :  { %195 = vperm.xlu2 %259, %v173_v42   ;;  %75 = vperm.xlu1 %255, %v64_v43  }
  0x8e   :  { %67 = vperm.xlu0 %256, %v64_v43  }
  0x95   :  { %258 = vset.pattern.permute.xlu1 %v290_v1 }
  0x96   :  { %257 = vset.pattern.permute.xlu0 %v289_v0  ;;  %189 = vperm.xlu1 %258, %v173_v42  }
  0x97   :  { %182 = vperm.xlu0 %257, %v172_v28  }
  0xd6   :  { %v112_v60 = vpop.permute.xlu2 %111 }
  0xd7   :  { %v115_v61 = vsub.f32 %v112_v60, %v333_v54  ;;  %v114_v62 = vsub.f32 %v112_v60, %v331_v53 }
  0xd9   :  { %v138_v63 = vrot.slane %v115_v61, 6 }
  0xdb   :  { %v139_v0 = vsel %vm93_vm2, %v114_v62, %v138_v63 }
  0xdc   :  { %233 = vst [vmem:[%s376_s1 + $0xc] sm:$0xf] %v139_v0 }
  0xde   :  { %v177_v17 = vpop.permute.xlu2 %176 }
  0xdf   :  { %v179_v35 = vsub.f32 %v331_v53, %v177_v17  ;;  %v180_v42 = vsub.f32 %v333_v54, %v177_v17 }
  0xe7   :  { %v196_v30 = vpop.permute.xlu2 %195 }
  0xe8   :  { %v198_v36 = vsub.f32 %v196_v30, %v318_v33 }
  0xee   :  { %v118_v1 = vpop.permute.xlu1 %117 }
  0xef   :  { %v120_v4 = vsub.f32 %v118_v1, %v318_v33  ;;  %v121_v5 = vsub.f32 %v118_v1, %v320_v34 }
  0xf1   :  { %v145_v6 = vrot.slane %v121_v5, 6  ;;  %v152_v7 = vmin.f32 %v114_v62, %v120_v4  ;;  %v153_v8 = vmin.f32 %v115_v61, %v121_v5 }
  0xf3   :  { %v146_v9 = vsel %vm93_vm2, %v120_v4, %v145_v6  ;;  %v154_v10 = vmin.f32 %v150_v2, %v152_v7  ;;  %v155_v11 = vmin.f32 %v151_v3, %v153_v8 }
  0xf4   :  { %234 = vst [vmem:[%s376_s1 + $0x10] sm:$0xf] %v146_v9 }
  0xf5   :  { %vm156_vm3 = vcmp.gt.f32.partialorder %v154_v10, 0.0  ;;  %vm157_vm4 = vcmp.gt.f32.partialorder %v155_v11, 0.0 }
  0xf6   :  { %v236_v13 = vsel %vm157_vm4, 1.0, %v293_v12  ;;  %v235_v15 = vsel %vm156_vm3, 1.0, %v293_v12 }
  0xf7   :  { %v164_v14 = vrot.slane %v236_v13, 6 }
  0xf9   :  { %v165_v16 = vsel %vm93_vm2, %v235_v15, %v164_v14 }
  0xfa   :  { %237 = vst [vmem:[%s376_s1 + $0x14] sm:$0xf] %v165_v16 }
  0xff   :  { %v76_v19 = vpop.permute.xlu1 %75 }
 0x100   :  { %v78_v20 = vsub.f32 %v312_v18, %v76_v19  ;;  %v79_v21 = vsub.f32 %v314_v22, %v76_v19  ;;  %v68_v23 = vpop.permute.xlu0 %67  ;;  %v199_v22 = vsub.f32 %v196_v30, %v320_v34 }
 0x101   :  { %v70_v24 = vsub.f32 %v27_v47, %v68_v23  ;;  %v71_v25 = vsub.f32 %v28_v48, %v68_v23 }
 0x102   :  { %v80_v26 = vand.u32 2147483647, %v78_v20  ;;  %v81_v27 = vand.u32 2147483647, %v79_v21 }
 0x103   :  { %v72_v28 = vand.u32 2147483647, %v70_v24  ;;  %v73_v29 = vand.u32 2147483647, %v71_v25 }
 0x105   :  { %v82_v31 = vadd.f32 %v80_v26, %v72_v28  ;;  %v83_v32 = vadd.f32 %v81_v27, %v73_v29 }
 0x107   :  { %vm84_vm5 = vcmp.le.f32.partialorder %v82_v31, 2.0  ;;  %vm85_vm6 = vcmp.le.f32.partialorder %v83_v32, 2.0 }
 0x108   :  { %v230_v37 = vsel %vm85_vm6, 1.0, %v293_v12  ;;  %v190_v18 = vpop.permute.xlu1 %189  ;;  %v229_v43 = vsel %vm84_vm5, 1.0, %v293_v12 }
 0x109   :  { %v92_v38 = vrot.slane %v230_v37, 6  ;;  %v192_v39 = vsub.f32 %v190_v18, %v331_v53  ;;  %v193_v40 = vsub.f32 %v190_v18, %v333_v54  ;;  %v183_v41 = vpop.permute.xlu0 %182 }
 0x10a   :  { %v185_v44 = vsub.f32 %v318_v33, %v183_v41  ;;  %v186_v45 = vsub.f32 %v320_v34, %v183_v41 }
 0x10b   :  { %v94_v46 = vsel %vm93_vm2, %v229_v43, %v92_v38  ;;  %v202_v47 = vmin.f32 %v192_v39, %v198_v36  ;;  %v203_v48 = vmin.f32 %v193_v40, %v199_v22 }
 0x10c   :  { %96 = vst [vmem:[%s376_s1] sm:$0xf] %v94_v46  ;;  %v200_v49 = vmin.f32 %v179_v35, %v185_v44  ;;  %v201_v50 = vmin.f32 %v180_v42, %v186_v45 }
 0x10e   :  { %v204_v51 = vmin.f32 %v200_v49, %v202_v47  ;;  %v205_v52 = vmin.f32 %v201_v50, %v203_v48 }
 0x110   :  { %vm206_vm7 = vcmp.gt.f32.partialorder %v204_v51, 0.0  ;;  %vm207_vm8 = vcmp.gt.f32.partialorder %v205_v52, 0.0 }
 0x111   :  { %v239_v53 = vsel %vm207_vm8, 1.0, %v293_v12  ;;  %v238_v55 = vsel %vm206_vm7, 1.0, %v293_v12 }
 0x112   :  { %v214_v54 = vrot.slane %v239_v53, 6 }
 0x114   :  { %v215_v33 = vsel %vm93_vm2, %v238_v55, %v214_v54 }
 0x115   :  { %240 = vst [vmem:[%s376_s1 + $0x18] sm:$0xf] %v215_v33 }
 0x116   :  { %223 = vsyncpa [#allocation3], 1 }

</bundles_post_ra>
